<compile_context>
chip_gen: v6e
topology: v6e:2x2x1
jax: 0.10.0
libtpu: 0.0.40
codegen_flags: <defaults>
</compile_context>

<pallas_src>
import functools

import jax
import jax.numpy as jnp
from jax.experimental import pallas as pl
from jax.experimental.pallas import tpu as pltpu


def _round_up(n, m):
    return ((n + m - 1) // m) * m


# ---------------------------------------------------------------- kernels ---

def dynamics_kernel(x_ref, in_ref, w1x_ref, w1in_ref, b1_ref, w2_ref, b2_ref,
                    o_ref):
    """Fused  relu(x@W1x + inp@W1in + b1) @ W2 + b2 + x  on one batch tile.

    x_ref   : (TB, Dxp)    residual / first half of the (virtual) concat
    in_ref  : (TB, Dinp)   second half of the concat
    w1x_ref : (Dxp, Hp)    rows of W1^T that multiply x
    w1in_ref: (Dinp, Hp)   rows of W1^T that multiply inp
    b1_ref  : (1, Hp)
    w2_ref  : (Hp, Dxp)
    b2_ref  : (1, Dxp)
    o_ref   : (TB, Dxp)
    """
    x = x_ref[...]
    h = jnp.dot(x, w1x_ref[...], preferred_element_type=jnp.float32)
    h = h + jnp.dot(in_ref[...], w1in_ref[...],
                    preferred_element_type=jnp.float32)
    h = jnp.maximum(h + b1_ref[...], 0.0)                       # ReLU
    y = jnp.dot(h, w2_ref[...], preferred_element_type=jnp.float32) + b2_ref[...]
    o_ref[...] = y + x                                          # residual


def dynamics_kernel_noinput(x_ref, w1x_ref, b1_ref, w2_ref, b2_ref, o_ref):
    """Same as above for forward(x, input=None)."""
    x = x_ref[...]
    h = jnp.maximum(
        jnp.dot(x, w1x_ref[...], preferred_element_type=jnp.float32)
        + b1_ref[...], 0.0)
    y = jnp.dot(h, w2_ref[...], preferred_element_type=jnp.float32) + b2_ref[...]
    o_ref[...] = y + x


# ------------------------------------------------------------- parameters ---

def init_params(key, d_x, d_in, hidden):
    """PyTorch nn.Linear layout: weight (out, in), bias (out,)."""
    k1, k2, k3, k4 = jax.random.split(key, 4)
    w1 = jax.random.normal(k1, (hidden, d_x + d_in), jnp.float32) * 0.1
    b1 = jax.random.normal(k2, (hidden,), jnp.float32) * 0.1
    w2 = jax.random.normal(k3, (d_x, hidden), jnp.float32) * 0.1
    b2 = jax.random.normal(k4, (d_x,), jnp.float32) * 0.1
    return (w1, b1, w2, b2)


def prepare_params(params, d_x, d_in):
    """One-time: transpose, split W1 into x/input halves, zero-pad to 128.

    Zero padding is exact: padded weight rows/cols and padded bias lanes are
    zero, so padded feature lanes of h and of the output stay zero.
    """
    w1, b1, w2, b2 = params
    hidden = w1.shape[0]
    d_xp = _round_up(d_x, 128)
    d_inp = _round_up(max(d_in, 1), 128)
    h_p = _round_up(hidden, 128)

    w1_t = jnp.asarray(w1).T          # (Dx + Din, H)
    w1x = w1_t[:d_x]                  # (Dx, H)
    w1in = w1_t[d_x:]                 # (Din, H)

    w1x_p = jnp.zeros((d_xp, h_p), jnp.float32).at[:d_x, :hidden].set(w1x)
    w1in_p = jnp.zeros((d_inp, h_p), jnp.float32).at[:d_in, :hidden].set(w1in)
    b1_p = jnp.zeros((1, h_p), jnp.float32).at[0, :hidden].set(b1)
    w2_p = jnp.zeros((h_p, d_xp), jnp.float32).at[:hidden, :d_x].set(jnp.asarray(w2).T)
    b2_p = jnp.zeros((1, d_xp), jnp.float32).at[0, :d_x].set(b2)
    return (w1x_p, w1in_p, b1_p, w2_p, b2_p)


# ----------------------------------------------------------------- forward ---

def dynamics_forward(x, inp, prepared, *, block_b=256):
    """Matches Dynamics.forward(x, input); `inp` may be None.

    `prepared` comes from prepare_params (padded / split weights).
    jit-compatible (shapes static under trace).
    """
    w1x, w1in, b1, w2, b2 = prepared
    B, d_x = x.shape
    d_xp, h_p = w1x.shape
    d_inp = w1in.shape[0]

    # Batch tile: as large as requested, padded to a multiple of 8 sublanes.
    tb = min(block_b, max(8, _round_up(B, 8)))
    b_p = _round_up(B, tb)
    grid = (b_p // tb,)

    x_p = jnp.zeros((b_p, d_xp), jnp.float32).at[:B, :d_x].set(x)

    def row_spec(d):          # batch-tiled activations / output
        return pl.BlockSpec((tb, d), lambda i: (i, 0))

    def fixed_spec(shape):    # weights / biases: VMEM-resident across the grid
        return pl.BlockSpec(shape, lambda i: (0, 0))

    compiler_params = pltpu.CompilerParams(
        dimension_semantics=("parallel",))

    if inp is not None:
        d_in = inp.shape[-1]
        in_p = jnp.zeros((b_p, d_inp), jnp.float32).at[:B, :d_in].set(inp)
        flops = 2 * b_p * (d_xp * h_p + d_inp * h_p + h_p * d_xp)
        bytes_accessed = 4 * (x_p.size + in_p.size + w1x.size + w1in.size
                              + b1.size + w2.size + b2.size + b_p * d_xp)
        out_p = pl.pallas_call(
            dynamics_kernel,
            out_shape=jax.ShapeDtypeStruct((b_p, d_xp), jnp.float32),
            grid=grid,
            in_specs=[row_spec(d_xp), row_spec(d_inp),
                      fixed_spec((d_xp, h_p)), fixed_spec((d_inp, h_p)),
                      fixed_spec((1, h_p)), fixed_spec((h_p, d_xp)),
                      fixed_spec((1, d_xp))],
            out_specs=row_spec(d_xp),
            compiler_params=compiler_params,
            cost_estimate=pl.CostEstimate(flops=flops, transcendentals=0,
                                          bytes_accessed=bytes_accessed),
        )(x_p, in_p, w1x, w1in, b1, w2, b2)
    else:
        flops = 2 * b_p * (d_xp * h_p + h_p * d_xp)
        bytes_accessed = 4 * (x_p.size + w1x.size + b1.size + w2.size
                              + b2.size + b_p * d_xp)
        out_p = pl.pallas_call(
            dynamics_kernel_noinput,
            out_shape=jax.ShapeDtypeStruct((b_p, d_xp), jnp.float32),
            grid=grid,
            in_specs=[row_spec(d_xp),
                      fixed_spec((d_xp, h_p)), fixed_spec((1, h_p)),
                      fixed_spec((h_p, d_xp)), fixed_spec((1, d_xp))],
            out_specs=row_spec(d_xp),
            compiler_params=compiler_params,
            cost_estimate=pl.CostEstimate(flops=flops, transcendentals=0,
                                          bytes_accessed=bytes_accessed),
        )(x_p, w1x, b1, w2, b2)

    return out_p[:B, :d_x]


# --------------------------------------------------------------- reference ---

def dynamics_reference(x, inp, params):
    """Pure-JAX reference with PyTorch-layout params (same math as nn module)."""
    w1, b1, w2, b2 = params
    h = jnp.concatenate([x, inp], axis=-1) if inp is not None else x
    h = jnp.maximum(h @ w1.T + b1, 0.0)
    return h @ w2.T + b2 + x


# --------------------------------------------------------------------- main ---

if __name__ == "__main__":
    # structure = [(Dx + Din, hidden), 'relu', (hidden, Dx)]
    B, Dx, Din, hidden = 8, 32, 16, 64

    key = jax.random.PRNGKey(0)
    kx, ki, kp, kp2, kx2, ki2 = jax.random.split(key, 6)
    x = jax.random.normal(kx, (B, Dx), jnp.float32)
    inp = jax.random.normal(ki, (B, Din), jnp.float32)

    # jit the whole wrapper so pads / pallas_call / slice fuse into one program.
    fwd = jax.jit(functools.partial(dynamics_forward, block_b=256))
    fwd_no_in = jax.jit(lambda x, prepared: dynamics_forward(x, None, prepared,
                                                             block_b=256))

    # --- forward(x, input) path ---
    params = init_params(kp, Dx, Din, hidden)
    prepared = prepare_params(params, Dx, Din)
    out = jax.block_until_ready(fwd(x, inp, prepared))
    ref = dynamics_reference(x, inp, params)
    assert out.shape == (B, Dx) and out.dtype == jnp.float32
    assert jnp.allclose(out, ref, atol=1e-4, rtol=1e-4), "mismatch (with input)"

    # --- forward(x) path (input=None); structure = [(Dx, hidden), 'relu', (hidden, Dx)] ---
    params0 = init_params(kp2, Dx, 0, hidden)
    prepared0 = prepare_params(params0, Dx, 0)
    out0 = jax.block_until_ready(fwd_no_in(x, prepared0))
    ref0 = dynamics_reference(x, None, params0)
    assert out0.shape == (B, Dx) and out0.dtype == jnp.float32
    assert jnp.allclose(out0, ref0, atol=1e-4, rtol=1e-4), "mismatch (no input)"

    # --- larger batch not divisible by the tile, exercises grid > 1 ---
    B2 = 300
    x2 = jax.random.normal(kx2, (B2, Dx), jnp.float32)
    inp2 = jax.random.normal(ki2, (B2, Din), jnp.float32)
    out2 = jax.block_until_ready(
        jax.jit(functools.partial(dynamics_forward, block_b=128))(x2, inp2, prepared))
    ref2 = dynamics_reference(x2, inp2, params)
    assert out2.shape == (B2, Dx)
    assert jnp.allclose(out2, ref2, atol=1e-4, rtol=1e-4), "mismatch (grid>1)"

    print("KERNEL_OK")
</pallas_src>

<mosaic_0001>
module attributes {stable_mosaic.version = 11 : i64} {
  func.func @dynamics_kernel(%arg0: i32, %arg1: memref<8x128xf32, #tpu.memory_space<vmem>>, %arg2: memref<8x128xf32, #tpu.memory_space<vmem>>, %arg3: memref<128x128xf32, #tpu.memory_space<vmem>>, %arg4: memref<128x128xf32, #tpu.memory_space<vmem>>, %arg5: memref<1x128xf32, #tpu.memory_space<vmem>>, %arg6: memref<128x128xf32, #tpu.memory_space<vmem>>, %arg7: memref<1x128xf32, #tpu.memory_space<vmem>>, %arg8: memref<8x128xf32, #tpu.memory_space<vmem>>) attributes {dimension_semantics = [#tpu.dimension_semantics<parallel>], iteration_bounds = array<i64: 1>, scalar_prefetch = 0 : i64, scratch_operands = 0 : i64, tpu.core_type = #tpu.core_type<tc>, window_params = [{transform_indices = @transform_0, window_bounds = array<i64: 8, 128>}, {transform_indices = @transform_1, window_bounds = array<i64: 8, 128>}, {pipeline_mode = #tpu.pipeline_mode<synchronous>, transform_indices = @transform_2, window_bounds = array<i64: 128, 128>}, {pipeline_mode = #tpu.pipeline_mode<synchronous>, transform_indices = @transform_3, window_bounds = array<i64: 128, 128>}, {pipeline_mode = #tpu.pipeline_mode<synchronous>, transform_indices = @transform_4, window_bounds = array<i64: 1, 128>}, {pipeline_mode = #tpu.pipeline_mode<synchronous>, transform_indices = @transform_5, window_bounds = array<i64: 128, 128>}, {pipeline_mode = #tpu.pipeline_mode<synchronous>, transform_indices = @transform_6, window_bounds = array<i64: 1, 128>}, {transform_indices = @transform_7, window_bounds = array<i64: 8, 128>}]} {
    %c0 = arith.constant 0 : index
    %c0_0 = arith.constant 0 : index
    %0 = vector.load %arg1[%c0, %c0_0] : memref<8x128xf32, #tpu.memory_space<vmem>>, vector<8x128xf32>
    %c0_1 = arith.constant 0 : index
    %c0_2 = arith.constant 0 : index
    %1 = vector.load %arg3[%c0_1, %c0_2] : memref<128x128xf32, #tpu.memory_space<vmem>>, vector<128x128xf32>
    %cst = arith.constant dense<0.000000e+00> : vector<8x128xf32>
    %2 = tpu.matmul %0, %1, %cst {dimension_numbers = #tpu.dot_dimension_numbers<[1], [0], [0], [1], [0, 0, 1, 1], [], []>} : vector<8x128xf32>, vector<128x128xf32>, vector<8x128xf32> -> vector<8x128xf32>
    %c0_3 = arith.constant 0 : index
    %c0_4 = arith.constant 0 : index
    %3 = vector.load %arg2[%c0_3, %c0_4] : memref<8x128xf32, #tpu.memory_space<vmem>>, vector<8x128xf32>
    %c0_5 = arith.constant 0 : index
    %c0_6 = arith.constant 0 : index
    %4 = vector.load %arg4[%c0_5, %c0_6] : memref<128x128xf32, #tpu.memory_space<vmem>>, vector<128x128xf32>
    %cst_7 = arith.constant dense<0.000000e+00> : vector<8x128xf32>
    %5 = tpu.matmul %3, %4, %cst_7 {dimension_numbers = #tpu.dot_dimension_numbers<[1], [0], [0], [1], [0, 0, 1, 1], [], []>} : vector<8x128xf32>, vector<128x128xf32>, vector<8x128xf32> -> vector<8x128xf32>
    %6 = arith.addf %2, %5 : vector<8x128xf32>
    %c0_8 = arith.constant 0 : index
    %c0_9 = arith.constant 0 : index
    %7 = vector.load %arg5[%c0_8, %c0_9] : memref<1x128xf32, #tpu.memory_space<vmem>>, vector<1x128xf32>
    %8 = vector.broadcast %7 : vector<1x128xf32> to vector<8x128xf32>
    %9 = arith.addf %6, %8 : vector<8x128xf32>
    %cst_10 = arith.constant 0.000000e+00 : f32
    %10 = vector.broadcast %cst_10 : f32 to vector<8x128xf32>
    %11 = arith.maximumf %9, %10 : vector<8x128xf32>
    %c0_11 = arith.constant 0 : index
    %c0_12 = arith.constant 0 : index
    %12 = vector.load %arg6[%c0_11, %c0_12] : memref<128x128xf32, #tpu.memory_space<vmem>>, vector<128x128xf32>
    %cst_13 = arith.constant dense<0.000000e+00> : vector<8x128xf32>
    %13 = tpu.matmul %11, %12, %cst_13 {dimension_numbers = #tpu.dot_dimension_numbers<[1], [0], [0], [1], [0, 0, 1, 1], [], []>} : vector<8x128xf32>, vector<128x128xf32>, vector<8x128xf32> -> vector<8x128xf32>
    %c0_14 = arith.constant 0 : index
    %c0_15 = arith.constant 0 : index
    %14 = vector.load %arg7[%c0_14, %c0_15] : memref<1x128xf32, #tpu.memory_space<vmem>>, vector<1x128xf32>
    %15 = vector.broadcast %14 : vector<1x128xf32> to vector<8x128xf32>
    %16 = arith.addf %13, %15 : vector<8x128xf32>
    %17 = arith.addf %16, %0 : vector<8x128xf32>
    %c0_16 = arith.constant 0 : index
    %c0_17 = arith.constant 0 : index
    %18 = vector.load %arg8[%c0_16, %c0_17] : memref<8x128xf32, #tpu.memory_space<vmem>>, vector<8x128xf32>
    tpu.vector_store %arg8[%c0_16, %c0_17], %17 {strides = array<i32>} : memref<8x128xf32, #tpu.memory_space<vmem>>, vector<8x128xf32>,
    return
  }
  func.func @transform_0(%arg0: i32) -> (i32, i32) {
    %c0_i32 = arith.constant 0 : i32
    %c0_i32_0 = arith.constant 0 : i32
    return %arg0, %c0_i32 : i32, i32
  }
  func.func @transform_1(%arg0: i32) -> (i32, i32) {
    %c0_i32 = arith.constant 0 : i32
    %c0_i32_0 = arith.constant 0 : i32
    return %arg0, %c0_i32 : i32, i32
  }
  func.func @transform_2(%arg0: i32) -> (i32, i32) {
    %c0_i32 = arith.constant 0 : i32
    %c0_i32_0 = arith.constant 0 : i32
    %c0_i32_1 = arith.constant 0 : i32
    return %c0_i32, %c0_i32_0 : i32, i32
  }
  func.func @transform_3(%arg0: i32) -> (i32, i32) {
    %c0_i32 = arith.constant 0 : i32
    %c0_i32_0 = arith.constant 0 : i32
    %c0_i32_1 = arith.constant 0 : i32
    return %c0_i32, %c0_i32_0 : i32, i32
  }
  func.func @transform_4(%arg0: i32) -> (i32, i32) {
    %c0_i32 = arith.constant 0 : i32
    %c0_i32_0 = arith.constant 0 : i32
    %c0_i32_1 = arith.constant 0 : i32
    return %c0_i32, %c0_i32_0 : i32, i32
  }
  func.func @transform_5(%arg0: i32) -> (i32, i32) {
    %c0_i32 = arith.constant 0 : i32
    %c0_i32_0 = arith.constant 0 : i32
    %c0_i32_1 = arith.constant 0 : i32
    return %c0_i32, %c0_i32_0 : i32, i32
  }
  func.func @transform_6(%arg0: i32) -> (i32, i32) {
    %c0_i32 = arith.constant 0 : i32
    %c0_i32_0 = arith.constant 0 : i32
    %c0_i32_1 = arith.constant 0 : i32
    return %c0_i32, %c0_i32_0 : i32, i32
  }
  func.func @transform_7(%arg0: i32) -> (i32, i32) {
    %c0_i32 = arith.constant 0 : i32
    %c0_i32_0 = arith.constant 0 : i32
    return %arg0, %c0_i32 : i32, i32
  }
}

</mosaic_0001>

<bundles_post_ra>
// kernel: dynamics_forward.1
= control target key start
LH: loop header
LB: loop body
LE: loop exit
PB: predicated region body
PF: predicated region fallthrough
CT: control target
= control target key end

     0   :  { %12 = vsyncpa [#allocation3], 0  ;;  %s744_s0 = inlined_call_operand.vmem [shape: f32[8,128], index: 0, kind: input, shape index: {}]   ;;  %s745_s1 = inlined_call_operand.vmem [shape: f32[8,128], index: 1, kind: input, shape index: {}]   ;;  %s746_s2 = inlined_call_operand.hbm [shape: f32[128,128], index: 2, kind: input, shape index: {}]   ;;  %s747_s3 = inlined_call_operand.hbm [shape: f32[128,128], index: 3, kind: input, shape index: {}]   ;;  %s748_s4 = inlined_call_operand.vmem [shape: f32[1,128], index: 4, kind: input, shape index: {}]   ;;  %s749_s5 = inlined_call_operand.hbm [shape: f32[128,128], index: 5, kind: input, shape index: {}]   ;;  %s750_s6 = inlined_call_operand.vmem [shape: f32[1,128], index: 6, kind: input, shape index: {}]   ;;  %s751_s7 = inlined_call_operand.hbm [shape: f32[8,128], index: 7, kind: output, shape index: {}]  }
   0x1   :  { %13 = vsyncpa [#allocation6], 0 }
   0x2   :  { %14 = vsyncpa [#allocation4], 0  ;;  %s614_s24 = smov [#allocation5]   ;;  %s615_s26 = smov [#allocation2]  }
   0x3   :  { %s36_s25 = sshll.u32 %s614_s24, 4  ;;  %s24_s27 = sshll.u32 %s615_s26, 4  ;;  %s37_s25 = int_to_ptr.vmem [resolvable:$true] %s36_s25  ;;  %s25_s27 = int_to_ptr.vmem [resolvable:$true] %s24_s27 }
   0x4   :  { %s536_s28 = scalar_lea.vmem %s37_s25, 2048  ;;  %p541_p1 = scmp.lt.s32.totalorder %s37_s25, %s37_s25 }
   0x5   :  { %p537_p0 = scmp.ne.s32.totalorder %s37_s25, %s536_s28  ;;  %p542_p2 = scmp.lt.s32.totalorder %s536_s28, %s536_s28 }
   0x7   :  { %p543_p3 = por %p542_p2, %p541_p1 }
   0x9   :  { %p544_p4 = pnand %p543_p3, %p537_p0 }
   0xb   :  { %547 = shalt.err (!%p544_p4)
}
   0xc   :  { %s616_s29 = smov 128   ;;  %s617_s30 = smov 8  }
   0xd   :  { %42 = dma.hbm_to_vmem [thread:$0]  %s747_s3, 2048, %s37_s25, [#allocation6], %s616_s29, %s616_s29, %s617_s30  }
   0xe   :  { %s556_s10 = scalar_lea.vmem %s25_s27, 2048  ;;  %p561_p6 = scmp.lt.s32.totalorder %s25_s27, %s25_s27 }
   0xf   :  { %p557_p5 = scmp.ne.s32.totalorder %s25_s27, %s556_s10  ;;  %p562_p7 = scmp.lt.s32.totalorder %s556_s10, %s556_s10 }
  0x11   :  { %p563_p8 = por %p562_p7, %p561_p6 }
  0x13   :  { %p564_p9 = pnand %p563_p8, %p557_p5 }
  0x15   :  { %567 = shalt.err (!%p564_p9)
}
  0x16   :  { %30 = dma.hbm_to_vmem [thread:$0]  %s746_s2, 2048, %s25_s27, [#allocation3], %s616_s29, %s616_s29, %s617_s30  }
  0x17   :  { %s618_s13 = smov [#allocation7]  }
  0x18   :  { %s50_s14 = sshll.u32 %s618_s13, 4  ;;  %s51_s14 = int_to_ptr.vmem [resolvable:$true] %s50_s14 }
  0x19   :  { %s576_s15 = scalar_lea.vmem %s51_s14, 2048  ;;  %p581_p11 = scmp.lt.s32.totalorder %s51_s14, %s51_s14 }
  0x1a   :  { %p577_p10 = scmp.ne.s32.totalorder %s51_s14, %s576_s15  ;;  %p582_p12 = scmp.lt.s32.totalorder %s576_s15, %s576_s15 }
  0x1c   :  { %p583_p13 = por %p582_p12, %p581_p11 }
  0x1e   :  { %p584_p0 = pnand %p583_p13, %p577_p10 }
  0x20   :  { %587 = shalt.err (!%p584_p0)
}
  0x21   :  { %56 = dma.hbm_to_vmem [thread:$0]  %s749_s5, 2048, %s51_s14, [#allocation6], %s616_s29, %s616_s29, %s617_s30  }
  0x22   :  { %608 = dma.done.wait [#allocation3], 2048  }
  0x23   :  { %609 = vsyncadd [#allocation3], 4294965248 }
  0x24   :  { %610 = dma.done.wait [#allocation6], 4096  }
  0x25   :  { %611 = vsyncadd [#allocation6], 4294963200  ;;  %v619_v0 = vmov 0.0   ;;  %vm620_vm0 = vmmov 0   ;;  %v101_v1 = vld [vmem:[#allocation5 + $0x78] sm:$0xff]  ;;  %v100_v3 = vld [vmem:[#allocation5 + $0x70] sm:$0xff] }
  0x26   :  { %415 = vmatprep.subr.mxu0 %v619_v0  ;;  %450 = vmatprep.subr.mxu1 %v619_v0  ;;  %v84_v2 = vld [vmem:[#allocation2 + $0x78] sm:$0xff]  ;;  %v83_v4 = vld [vmem:[#allocation2 + $0x70] sm:$0xff]  ;;  %v99_v5 = vld [vmem:[#allocation5 + $0x68] sm:$0xff]  ;;  %s621_s21 = smov [#allocation8]  }
  0x27   :  { %447 = vmatprep.mubr.msk.f32.mxu0 %vm620_vm0, %v619_v0  ;;  %482 = vmatprep.mubr.msk.f32.mxu1 %vm620_vm0, %v619_v0  ;;  %v82_v6 = vld [vmem:[#allocation2 + $0x68] sm:$0xff]  ;;  %v98_v7 = vld [vmem:[#allocation5 + $0x60] sm:$0xff]  ;;  %v97_v9 = vld [vmem:[#allocation5 + $0x58] sm:$0xff]  ;;  %s352_s22 = sshll.u32 %s621_s21, 4  ;;  %s353_s22 = int_to_ptr.vmem [resolvable:$true] %s352_s22 }
  0x28   :  { %416 = vmatpush3.msra.mxu0 %v101_v1  ;;  %451 = vmatpush3.msra.mxu1 %v84_v2  ;;  %v81_v8 = vld [vmem:[#allocation2 + $0x60] sm:$0xff]  ;;  %v80_v10 = vld [vmem:[#allocation2 + $0x58] sm:$0xff]  ;;  %v96_v11 = vld [vmem:[#allocation5 + $0x50] sm:$0xff]  ;;  %p593_p2 = scmp.lt.s32.totalorder %s353_s22, %s353_s22 }
  0x29   :  { %417 = vmatprep.subr.mxu0 %v619_v0  ;;  %452 = vmatprep.subr.mxu1 %v619_v0  ;;  %v79_v12 = vld [vmem:[#allocation2 + $0x50] sm:$0xff]  ;;  %v95_v13 = vld [vmem:[#allocation5 + $0x48] sm:$0xff]  ;;  %v94_v15 = vld [vmem:[#allocation5 + $0x40] sm:$0xff] }
  0x2a   :  { %418 = vmatpush3.msra.mxu0 %v100_v3  ;;  %453 = vmatpush3.msra.mxu1 %v83_v4  ;;  %v78_v14 = vld [vmem:[#allocation2 + $0x48] sm:$0xff]  ;;  %v77_v16 = vld [vmem:[#allocation2 + $0x40] sm:$0xff]  ;;  %v93_v17 = vld [vmem:[#allocation5 + $0x38] sm:$0xff] }
  0x2b   :  { %419 = vmatprep.subr.mxu0 %v619_v0  ;;  %454 = vmatprep.subr.mxu1 %v619_v0  ;;  %v76_v18 = vld [vmem:[#allocation2 + $0x38] sm:$0xff]  ;;  %v92_v19 = vld [vmem:[#allocation5 + $0x30] sm:$0xff]  ;;  %v91_v21 = vld [vmem:[#allocation5 + $0x28] sm:$0xff] }
  0x2c   :  { %420 = vmatpush3.msra.mxu0 %v99_v5  ;;  %455 = vmatpush3.msra.mxu1 %v82_v6  ;;  %v75_v20 = vld [vmem:[#allocation2 + $0x30] sm:$0xff]  ;;  %v74_v22 = vld [vmem:[#allocation2 + $0x28] sm:$0xff]  ;;  %v90_v23 = vld [vmem:[#allocation5 + $0x20] sm:$0xff] }
  0x2d   :  { %421 = vmatprep.subr.mxu0 %v619_v0  ;;  %456 = vmatprep.subr.mxu1 %v619_v0  ;;  %v73_v24 = vld [vmem:[#allocation2 + $0x20] sm:$0xff]  ;;  %v89_v25 = vld [vmem:[#allocation5 + $0x18] sm:$0xff]  ;;  %v88_v27 = vld [vmem:[#allocation5 + $0x10] sm:$0xff] }
  0x2e   :  { %422 = vmatpush3.msra.mxu0 %v98_v7  ;;  %457 = vmatpush3.msra.mxu1 %v81_v8  ;;  %v72_v26 = vld [vmem:[#allocation2 + $0x18] sm:$0xff]  ;;  %v71_v28 = vld [vmem:[#allocation2 + $0x10] sm:$0xff]  ;;  %v87_v29 = vld [vmem:[#allocation5 + $0x8] sm:$0xff] }
  0x2f   :  { %423 = vmatprep.subr.mxu0 %v619_v0  ;;  %458 = vmatprep.subr.mxu1 %v619_v0  ;;  %v70_v30 = vld [vmem:[#allocation2 + $0x8] sm:$0xff]  ;;  %v86_v31 = vld [vmem:[#allocation5] sm:$0xff]  ;;  %v266_v35 = vld [vmem:[#allocation7 + $0x78] sm:$0xff] }
  0x30   :  { %424 = vmatpush3.msra.mxu0 %v97_v9  ;;  %459 = vmatpush3.msra.mxu1 %v80_v10  ;;  %v69_v32 = vld [vmem:[#allocation2] sm:$0xff]  ;;  %v265_v36 = vld [vmem:[#allocation7 + $0x70] sm:$0xff]  ;;  %v264_v37 = vld [vmem:[#allocation7 + $0x68] sm:$0xff] }
  0x31   :  { %425 = vmatprep.subr.mxu0 %v619_v0  ;;  %460 = vmatprep.subr.mxu1 %v619_v0  ;;  %v85_v33 = vld [vmem:[%s745_s1] sm:$0xff]  ;;  %v262_v39 = vld [vmem:[#allocation7 + $0x58] sm:$0xff]  ;;  %v261_v40 = vld [vmem:[#allocation7 + $0x50] sm:$0xff] }
  0x32   :  { %426 = vmatpush3.msra.mxu0 %v96_v11  ;;  %461 = vmatpush3.msra.mxu1 %v79_v12  ;;  %v711_v34 = vld [vmem:[%s744_s0] sm:$0xff]  ;;  %v260_v41 = vld [vmem:[#allocation7 + $0x48] sm:$0xff]  ;;  %v258_v43 = vld [vmem:[#allocation7 + $0x38] sm:$0xff] }
  0x33   :  { %427 = vmatprep.subr.mxu0 %v619_v0  ;;  %462 = vmatprep.subr.mxu1 %v619_v0  ;;  %v263_v38 = vld [vmem:[#allocation7 + $0x60] sm:$0xff]  ;;  %v257_v44 = vld [vmem:[#allocation7 + $0x30] sm:$0xff]  ;;  %v256_v45 = vld [vmem:[#allocation7 + $0x28] sm:$0xff] }
  0x34   :  { %428 = vmatpush3.msra.mxu0 %v95_v13  ;;  %463 = vmatpush3.msra.mxu1 %v78_v14  ;;  %v259_v42 = vld [vmem:[#allocation7 + $0x40] sm:$0xff]  ;;  %v254_v47 = vld [vmem:[#allocation7 + $0x18] sm:$0xff]  ;;  %v253_v48 = vld [vmem:[#allocation7 + $0x10] sm:$0xff] }
  0x35   :  { %429 = vmatprep.subr.mxu0 %v619_v0  ;;  %464 = vmatprep.subr.mxu1 %v619_v0  ;;  %v255_v46 = vld [vmem:[#allocation7 + $0x20] sm:$0xff]  ;;  %v252_v49 = vld [vmem:[#allocation7 + $0x8] sm:$0xff] }
  0x36   :  { %430 = vmatpush3.msra.mxu0 %v94_v15  ;;  %465 = vmatpush3.msra.mxu1 %v77_v16  ;;  %v251_v50 = vld [vmem:[#allocation7] sm:$0xff] }
  0x37   :  { %431 = vmatprep.subr.mxu0 %v619_v0  ;;  %466 = vmatprep.subr.mxu1 %v619_v0  ;;  %v362_v53 = vld [vmem:[%s748_s4] ss:$0 sm:$0xff]  ;;  %s588_s4 = scalar_lea.vmem %s353_s22, 128 }
  0x38   :  { %432 = vmatpush3.msra.mxu0 %v93_v17  ;;  %467 = vmatpush3.msra.mxu1 %v76_v18  ;;  %v363_v59 = vld [vmem:[%s750_s6] ss:$0 sm:$0xff]  ;;  %p589_p1 = scmp.ne.s32.totalorder %s353_s22, %s588_s4  ;;  %p594_p3 = scmp.lt.s32.totalorder %s588_s4, %s588_s4 }
  0x39   :  { %433 = vmatprep.subr.mxu0 %v619_v0  ;;  %468 = vmatprep.subr.mxu1 %v619_v0 }
  0x3a   :  { %434 = vmatpush3.msra.mxu0 %v92_v19  ;;  %469 = vmatpush3.msra.mxu1 %v75_v20  ;;  %p595_p4 = por %p594_p3, %p593_p2 }
  0x3b   :  { %435 = vmatprep.subr.mxu0 %v619_v0  ;;  %470 = vmatprep.subr.mxu1 %v619_v0 }
  0x3c   :  { %436 = vmatpush3.msra.mxu0 %v91_v21  ;;  %471 = vmatpush3.msra.mxu1 %v74_v22  ;;  %p596_p5 = pnand %p595_p4, %p589_p1 }
  0x3d   :  { %437 = vmatprep.subr.mxu0 %v619_v0  ;;  %472 = vmatprep.subr.mxu1 %v619_v0 }
  0x3e   :  { %438 = vmatpush3.msra.mxu0 %v90_v23  ;;  %473 = vmatpush3.msra.mxu1 %v73_v24 }
  0x3f   :  { %439 = vmatprep.subr.mxu0 %v619_v0  ;;  %474 = vmatprep.subr.mxu1 %v619_v0 }
  0x40   :  { %440 = vmatpush3.msra.mxu0 %v89_v25  ;;  %475 = vmatpush3.msra.mxu1 %v72_v26 }
  0x41   :  { %441 = vmatprep.subr.mxu0 %v619_v0  ;;  %476 = vmatprep.subr.mxu1 %v619_v0 }
  0x42   :  { %442 = vmatpush3.msra.mxu0 %v88_v27  ;;  %477 = vmatpush3.msra.mxu1 %v71_v28 }
  0x43   :  { %443 = vmatprep.subr.mxu0 %v619_v0  ;;  %478 = vmatprep.subr.mxu1 %v619_v0 }
  0x44   :  { %444 = vmatpush3.msra.mxu0 %v87_v29  ;;  %479 = vmatpush3.msra.mxu1 %v70_v30 }
  0x45   :  { %445 = vmatprep.subr.mxu0 %v619_v0  ;;  %480 = vmatprep.subr.mxu1 %v619_v0 }
  0x46   :  { %446 = vmatpush3.msra.mxu0 %v86_v31  ;;  %481 = vmatpush3.msra.mxu1 %v69_v32 }
  0x47   :  { %448 = vmatmul.mubr.f32.vlgmr.msra.gmra.mxu0 %v85_v33  ;;  %483 = vmatmul.mubr.f32.vlgmr.msra.gmra.mxu1 %v711_v34 }
  0x48   :  { %485 = vmatprep.subr.mxu0 %v619_v0  ;;  %517 = vmatprep.mubr.msk.f32.mxu0 %vm620_vm0, %v619_v0 }
  0x49   :  { %486 = vmatpush3.msra.mxu0 %v266_v35 }
  0x4a   :  { %487 = vmatprep.subr.mxu0 %v619_v0 }
  0x4b   :  { %488 = vmatpush3.msra.mxu0 %v265_v36 }
  0x4c   :  { %489 = vmatprep.subr.mxu0 %v619_v0 }
  0x4d   :  { %490 = vmatpush3.msra.mxu0 %v264_v37 }
  0x4e   :  { %491 = vmatprep.subr.mxu0 %v619_v0 }
  0x4f   :  { %492 = vmatpush3.msra.mxu0 %v263_v38 }
  0x50   :  { %493 = vmatprep.subr.mxu0 %v619_v0 }
  0x51   :  { %494 = vmatpush3.msra.mxu0 %v262_v39 }
  0x52   :  { %495 = vmatprep.subr.mxu0 %v619_v0 }
  0x53   :  { %496 = vmatpush3.msra.mxu0 %v261_v40 }
  0x54   :  { %497 = vmatprep.subr.mxu0 %v619_v0 }
  0x55   :  { %498 = vmatpush3.msra.mxu0 %v260_v41 }
  0x56   :  { %499 = vmatprep.subr.mxu0 %v619_v0 }
  0x57   :  { %500 = vmatpush3.msra.mxu0 %v259_v42 }
  0x58   :  { %501 = vmatprep.subr.mxu0 %v619_v0 }
  0x59   :  { %502 = vmatpush3.msra.mxu0 %v258_v43 }
  0x5a   :  { %503 = vmatprep.subr.mxu0 %v619_v0 }
  0x5b   :  { %504 = vmatpush3.msra.mxu0 %v257_v44 }
  0x5c   :  { %505 = vmatprep.subr.mxu0 %v619_v0 }
  0x5d   :  { %506 = vmatpush3.msra.mxu0 %v256_v45 }
  0x5e   :  { %507 = vmatprep.subr.mxu0 %v619_v0 }
  0x5f   :  { %508 = vmatpush3.msra.mxu0 %v255_v46 }
  0x60   :  { %509 = vmatprep.subr.mxu0 %v619_v0 }
  0x61   :  { %510 = vmatpush3.msra.mxu0 %v254_v47 }
  0x62   :  { %511 = vmatprep.subr.mxu0 %v619_v0 }
  0x63   :  { %512 = vmatpush3.msra.mxu0 %v253_v48 }
  0x64   :  { %513 = vmatprep.subr.mxu0 %v619_v0 }
  0x65   :  { %514 = vmatpush3.msra.mxu0 %v252_v49 }
  0x66   :  { %515 = vmatprep.subr.mxu0 %v619_v0 }
  0x67   :  { %516 = vmatpush3.msra.mxu0 %v251_v50 }
 0x107   :  { %v168_v51 = vpop.f32.mrf.mxu0  ;;  %v238_v52 = vpop.f32.mrf.mxu1 }
 0x108   :  { %v239_v54 = vadd.f32 %v238_v52, %v168_v51 }
 0x109   :  { %v449_v55 = vpop.f32.mrf.mxu0  ;;  %v484_v56 = vpop.f32.mrf.mxu1 }
 0x10a   :  { %v249_v57 = vadd.f32 %v362_v53, %v239_v54 }
 0x10c   :  { %v250_v58 = vmax.f32 %v249_v57, 0.0 }
 0x10e   :  { %518 = vmatmul.mubr.f32.vlgmr.msra.gmra.mxu0 %v250_v58 }
 0x1ce   :  { %v340_v60 = vpop.f32.mrf.mxu0 }
 0x1cf   :  { %v341_v61 = vadd.f32 %v363_v59, %v340_v60 }
 0x1d0   :  { %v519_v62 = vpop.f32.mrf.mxu0 }
 0x1d1   :  { %v344_v63 = vadd.f32 %v341_v61, %v711_v34 }
 0x1d3   :  { %345 = vst [vmem:[#allocation8] sm:$0xff] %v344_v63 }
 0x1d4   :  { %599 = shalt.err (!%p596_p5)
}
 0x1d5   :  { %355 = dma.vmem_to_hbm [thread:$0]  %s353_s22, 128, %s751_s7, [#allocation4]  }
 0x1d6   :  { %612 = dma.done.wait [#allocation4], 128  }
 0x1d7   :  { %613 = vsyncadd [#allocation4], 4294967168 }
 0x1d8   :  { %359 = vsyncpa [#allocation3], 1 }
 0x1d9   :  { %360 = vsyncpa [#allocation6], 1 }
 0x1da   :  { %361 = vsyncpa [#allocation4], 1 }

</bundles_post_ra>
